<compile_context>
chip_gen: v7x
topology: tpu7x:2x2x1
jax: 0.10.0
libtpu: 0.0.40
codegen_flags: <defaults>
</compile_context>

<pallas_src>
import functools

import jax
import jax.numpy as jnp
from jax import lax
from jax.experimental import pallas as pl
from jax.experimental.pallas import tpu as pltpu

LANES = 128
SUBLANES = 8
MAX_BLOCK_ROWS = 2048  # 2048*128*4B = 1 MiB per f32 input tile per pipeline buffer


def _mse_kernel(pred_ref, real_ref, out_ref, acc_ref, *, block_rows, n_rows):
    c = pl.program_id(0)      # core-split axis ("parallel": both TCs on v7x)
    i = pl.program_id(1)      # sequential reduction axis ("arbitrary")
    n_i = pl.num_programs(1)

    @pl.when(i == 0)
    def _():
        acc_ref[...] = jnp.zeros_like(acc_ref)

    d = pred_ref[...].astype(jnp.float32) - real_ref[...].astype(jnp.float32)
    sq = d * d

    # Mask rows beyond the real array: partial boundary blocks and fully
    # out-of-range blocks (from the 2-way core split) contain unspecified data.
    row_start = (c * n_i + i) * block_rows
    row_ids = lax.broadcasted_iota(jnp.int32, sq.shape, 0) + row_start
    sq = jnp.where(row_ids < n_rows, sq, 0.0)

    acc_ref[...] += sq  # pure VPU accumulate, overlaps with the DMA stream

    @pl.when(i == n_i - 1)
    def _():
        # One cross-lane/sublane reduce per core, at the very end.
        out_ref[0, 0] = jnp.sum(acc_ref[...])


def custom_loss(pred, real):
    """JAX/Pallas equivalent of CustomLoss.forward: mean((pred - real)**2)."""
    assert pred.shape == real.shape, "pred and real must have the same shape"
    n = int(pred.size)

    # Keep native dtype (no wrapper-side f32 upcast -> no extra HBM copies).
    pred_flat = jnp.ravel(pred)
    real_flat = jnp.ravel(real)

    # Tiny tail pad only when n is not already a multiple of 8*128.  Padded
    # slots are zero in both tensors so their squared diff contributes 0.
    tile_elems = SUBLANES * LANES
    rem = n % tile_elems
    if rem:
        pad = tile_elems - rem
        pred_flat = jnp.pad(pred_flat, (0, pad))
        real_flat = jnp.pad(real_flat, (0, pad))

    rows = pred_flat.shape[0] // LANES  # always a multiple of SUBLANES
    pred2d = pred_flat.reshape(rows, LANES)
    real2d = real_flat.reshape(rows, LANES)

    block_rows = min(MAX_BLOCK_ROWS, rows)          # multiple of 8, <= rows
    n_blocks = pl.cdiv(rows, block_rows)
    n_splits = 2 if n_blocks >= 2 else 1            # use both TCs on v7x
    steps = pl.cdiv(n_blocks, n_splits)

    in_spec = pl.BlockSpec((block_rows, LANES), lambda c, i: (c * steps + i, 0))
    itemsize = jnp.dtype(pred.dtype).itemsize

    partial_sums = pl.pallas_call(
        functools.partial(_mse_kernel, block_rows=block_rows, n_rows=rows),
        out_shape=jax.ShapeDtypeStruct((n_splits, 1), jnp.float32),
        grid_spec=pltpu.PrefetchScalarGridSpec(
            num_scalar_prefetch=0,
            grid=(n_splits, steps),
            in_specs=[in_spec, in_spec],
            out_specs=pl.BlockSpec(
                (1, 1), lambda c, i: (c, 0), memory_space=pltpu.SMEM
            ),
            scratch_shapes=[pltpu.VMEM((block_rows, LANES), jnp.float32)],
        ),
        compiler_params=pltpu.CompilerParams(
            dimension_semantics=("parallel", "arbitrary"),
        ),
        cost_estimate=pl.CostEstimate(
            flops=3 * n,
            transcendentals=0,
            bytes_accessed=2 * n * itemsize + n_splits * 4,
        ),
    )(pred2d, real2d)

    # Combine per-core partial sums and divide by the TRUE element count.
    return jnp.sum(partial_sums) / jnp.float32(n)


if __name__ == "__main__":
    key = jax.random.PRNGKey(0)
    k1, k2, k3, k4 = jax.random.split(key, 4)

    # Small shapes consistent with a typical prediction/target pair.
    shape = (2, 4, 16, 16)
    pred = jax.random.normal(k1, shape, dtype=jnp.float32)
    real = jax.random.normal(k2, shape, dtype=jnp.float32)

    loss = custom_loss(pred, real)
    loss = jax.block_until_ready(loss)
    ref = jnp.mean((pred - real) ** 2)
    assert jnp.allclose(loss, ref, rtol=1e-5, atol=1e-6), (loss, ref)

    # Ragged shape exercises the tail-pad + partial-block masking path.
    shape2 = (3, 5, 7)
    pred2 = jax.random.normal(k3, shape2, dtype=jnp.float32)
    real2 = jax.random.normal(k4, shape2, dtype=jnp.float32)

    loss2 = custom_loss(pred2, real2)
    loss2 = jax.block_until_ready(loss2)
    ref2 = jnp.mean((pred2 - real2) ** 2)
    assert jnp.allclose(loss2, ref2, rtol=1e-5, atol=1e-6), (loss2, ref2)

    print("KERNEL_OK")
</pallas_src>

<mosaic_0001>
module attributes {stable_mosaic.version = 11 : i64} {
  func.func @_mse_kernel(%arg0: i32, %arg1: i32, %arg2: memref<16x128xf32, #tpu.memory_space<vmem>>, %arg3: memref<16x128xf32, #tpu.memory_space<vmem>>, %arg4: memref<1x1xf32, #tpu.memory_space<smem>>, %arg5: memref<16x128xf32, #tpu.memory_space<vmem>>) attributes {dimension_semantics = [#tpu.dimension_semantics<parallel>, #tpu.dimension_semantics<arbitrary>], iteration_bounds = array<i64: 1, 1>, scalar_prefetch = 0 : i64, scratch_operands = 1 : i64, tpu.core_type = #tpu.core_type<tc>, window_params = [{transform_indices = @transform_0, window_bounds = array<i64: 16, 128>}, {transform_indices = @transform_1, window_bounds = array<i64: 16, 128>}, {transform_indices = @transform_2, window_bounds = array<i64: 1, 1>}]} {
    %c0_i32 = arith.constant 0 : i32
    %0 = arith.cmpi eq, %arg1, %c0_i32 : i32
    %1 = arith.extui %0 : i1 to i32
    %c0_i32_0 = arith.constant 0 : i32
    %2 = arith.cmpi ne, %1, %c0_i32_0 : i32
    scf.if %2 {
      %cst_11 = arith.constant 0.000000e+00 : f32
      %23 = vector.broadcast %cst_11 : f32 to vector<16x128xf32>
      %c0_12 = arith.constant 0 : index
      %c0_13 = arith.constant 0 : index
      %24 = vector.load %arg5[%c0_12, %c0_13] : memref<16x128xf32, #tpu.memory_space<vmem>>, vector<16x128xf32>
      tpu.vector_store %arg5[%c0_12, %c0_13], %23 {strides = array<i32>} : memref<16x128xf32, #tpu.memory_space<vmem>>, vector<16x128xf32>,
    } else {
    }
    %c0 = arith.constant 0 : index
    %c0_1 = arith.constant 0 : index
    %3 = vector.load %arg2[%c0, %c0_1] : memref<16x128xf32, #tpu.memory_space<vmem>>, vector<16x128xf32>
    %c0_2 = arith.constant 0 : index
    %c0_3 = arith.constant 0 : index
    %4 = vector.load %arg3[%c0_2, %c0_3] : memref<16x128xf32, #tpu.memory_space<vmem>>, vector<16x128xf32>
    %5 = arith.subf %3, %4 : vector<16x128xf32>
    %6 = arith.mulf %5, %5 : vector<16x128xf32>
    %c1_i32 = arith.constant 1 : i32
    %7 = arith.muli %arg0, %c1_i32 : i32
    %8 = arith.addi %7, %arg1 : i32
    %c16_i32 = arith.constant 16 : i32
    %9 = arith.muli %8, %c16_i32 : i32
    %10 = tpu.iota {dimensions = array<i32: 0>} : vector<16x128xi32>
    %11 = vector.broadcast %9 : i32 to vector<16x128xi32>
    %12 = arith.addi %10, %11 : vector<16x128xi32>
    %c16_i32_4 = arith.constant 16 : i32
    %13 = vector.broadcast %c16_i32_4 : i32 to vector<16x128xi32>
    %14 = arith.cmpi slt, %12, %13 : vector<16x128xi32>
    %cst = arith.constant 0.000000e+00 : f32
    %15 = vector.broadcast %cst : f32 to vector<16x128xf32>
    %16 = arith.select %14, %6, %15 : vector<16x128xi1>, vector<16x128xf32>
    %c0_5 = arith.constant 0 : index
    %c0_6 = arith.constant 0 : index
    %17 = vector.load %arg5[%c0_5, %c0_6] : memref<16x128xf32, #tpu.memory_space<vmem>>, vector<16x128xf32>
    %18 = arith.addf %17, %16 : vector<16x128xf32>
    %c0_7 = arith.constant 0 : index
    %c0_8 = arith.constant 0 : index
    %19 = vector.load %arg5[%c0_7, %c0_8] : memref<16x128xf32, #tpu.memory_space<vmem>>, vector<16x128xf32>
    tpu.vector_store %arg5[%c0_7, %c0_8], %18 {strides = array<i32>} : memref<16x128xf32, #tpu.memory_space<vmem>>, vector<16x128xf32>,
    %c0_i32_9 = arith.constant 0 : i32
    %20 = arith.cmpi eq, %arg1, %c0_i32_9 : i32
    %21 = arith.extui %20 : i1 to i32
    %c0_i32_10 = arith.constant 0 : i32
    %22 = arith.cmpi ne, %21, %c0_i32_10 : i32
    scf.if %22 {
      %c0_11 = arith.constant 0 : index
      %c0_12 = arith.constant 0 : index
      %23 = vector.load %arg5[%c0_11, %c0_12] : memref<16x128xf32, #tpu.memory_space<vmem>>, vector<16x128xf32>
      %24 = vector.shape_cast %23 : vector<16x128xf32> to vector<1x16x128xf32>
      %cst_13 = arith.constant dense<0.000000e+00> : vector<1xf32>
      %25 = vector.multi_reduction <add>, %24, %cst_13 [1, 2] : vector<1x16x128xf32> to vector<1xf32>
      %26 = vector.shape_cast %25 : vector<1xf32> to vector<1x1x1xf32>
      %27 = vector.extract %26[0, 0, 0] : f32 from vector<1x1x1xf32>
      %c0_14 = arith.constant 0 : index
      %c0_15 = arith.constant 0 : index
      %28 = memref.load %arg4[%c0_14, %c0_15] : memref<1x1xf32, #tpu.memory_space<smem>>
      memref.store %27, %arg4[%c0_14, %c0_15] : memref<1x1xf32, #tpu.memory_space<smem>>
    } else {
    }
    return
  }
  func.func @transform_0(%arg0: i32, %arg1: i32) -> (i32, i32) {
    %c1_i32 = arith.constant 1 : i32
    %0 = arith.muli %arg0, %c1_i32 : i32
    %1 = arith.addi %0, %arg1 : i32
    %c0_i32 = arith.constant 0 : i32
    %c0_i32_0 = arith.constant 0 : i32
    return %1, %c0_i32 : i32, i32
  }
  func.func @transform_1(%arg0: i32, %arg1: i32) -> (i32, i32) {
    %c1_i32 = arith.constant 1 : i32
    %0 = arith.muli %arg0, %c1_i32 : i32
    %1 = arith.addi %0, %arg1 : i32
    %c0_i32 = arith.constant 0 : i32
    %c0_i32_0 = arith.constant 0 : i32
    return %1, %c0_i32 : i32, i32
  }
  func.func @transform_2(%arg0: i32, %arg1: i32) -> (i32, i32) {
    %c0_i32 = arith.constant 0 : i32
    %c0_i32_0 = arith.constant 0 : i32
    return %arg0, %c0_i32 : i32, i32
  }
}

</mosaic_0001>

<bundles_post_ra>
// kernel: tpu_custom_call.1
= control target key start
LH: loop header
LB: loop body
LE: loop exit
PB: predicated region body
PF: predicated region fallthrough
CT: control target
= control target key end

     0   :  { %7 = vsyncpa [#allocation4], 0  ;;  %s239_s0 = inlined_call_operand.hbm [shape: f32[16,128], index: 0, kind: input, shape index: {}]   ;;  %s240_s1 = inlined_call_operand.hbm [shape: f32[16,128], index: 1, kind: input, shape index: {}]   ;;  %s241_s2 = inlined_call_operand.hbm [shape: f32[1,1], index: 2, kind: output, shape index: {}]  }
   0x1   :  { %8 = vsyncpa [#allocation7], 0 }
   0x2   :  { %9 = vsyncpa [#allocation5], 0  ;;  %s183_s9 = smov [#allocation3]   ;;  %s123_s13 = scalar_lea.hbm %s239_s0, 256 }
   0x3   :  { %s19_s10 = sshll.u32 %s183_s9, 4  ;;  %p124_p0 = scmp.ne.s32.totalorder %s239_s0, %s123_s13  ;;  %s20_s10 = int_to_ptr.vmem [resolvable:$true] %s19_s10 }
   0x4   :  { %p127_p1 = scmp.lt.u32.totalorder %s123_s13, %s239_s0 }
   0x6   :  { %p129_p2 = pnand %p127_p1, %p124_p0 }
   0x8   :  { %132 = shalt.err (!%p129_p2)
}
   0x9   :  { %s133_s18 = scalar_lea.vmem %s20_s10, 256  ;;  %p138_p4 = scmp.lt.s32.totalorder %s20_s10, %s20_s10 }
   0xa   :  { %p134_p3 = scmp.ne.s32.totalorder %s20_s10, %s133_s18  ;;  %p139_p5 = scmp.lt.s32.totalorder %s133_s18, %s133_s18 }
   0xc   :  { %p140_p6 = por %p139_p5, %p138_p4 }
   0xe   :  { %p141_p7 = pnand %p140_p6, %p134_p3 }
  0x10   :  { %144 = shalt.err (!%p141_p7)
}
  0x11   :  { %s184_s19 = smov 128   ;;  %s185_s20 = smov 8  }
  0x12   :  { %25 = dma.hbm_to_vmem [thread:$0]  %s239_s0, 256, %s20_s10, [#allocation4], %s184_s19, %s184_s19, %s185_s20  }
  0x13   :  { %s186_s23 = smov [#allocation6]   ;;  %s145_s27 = scalar_lea.hbm %s240_s1, 256 }
  0x14   :  { %s35_s24 = sshll.u32 %s186_s23, 4  ;;  %p146_p8 = scmp.ne.s32.totalorder %s240_s1, %s145_s27  ;;  %s36_s24 = int_to_ptr.vmem [resolvable:$true] %s35_s24 }
  0x15   :  { %p149_p9 = scmp.lt.u32.totalorder %s145_s27, %s240_s1 }
  0x17   :  { %p151_p10 = pnand %p149_p9, %p146_p8 }
  0x19   :  { %154 = shalt.err (!%p151_p10)
}
  0x1a   :  { %s155_s4 = scalar_lea.vmem %s36_s24, 256  ;;  %p160_p12 = scmp.lt.s32.totalorder %s36_s24, %s36_s24 }
  0x1b   :  { %p156_p11 = scmp.ne.s32.totalorder %s36_s24, %s155_s4  ;;  %p161_p13 = scmp.lt.s32.totalorder %s155_s4, %s155_s4 }
  0x1d   :  { %p162_p0 = por %p161_p13, %p160_p12 }
  0x1f   :  { %p163_p1 = pnand %p162_p0, %p156_p11 }
  0x21   :  { %166 = shalt.err (!%p163_p1)
}
  0x22   :  { %41 = dma.hbm_to_vmem [thread:$0]  %s240_s1, 256, %s36_s24, [#allocation7], %s184_s19, %s184_s19, %s185_s20  }
  0x23   :  { %177 = dma.done.wait [#allocation4], 256  }
  0x24   :  { %178 = vsyncadd [#allocation4], 4294967040 }
  0x25   :  { %179 = dma.done.wait [#allocation7], 256  }
  0x26   :  { %180 = vsyncadd [#allocation7], 4294967040  ;;  %v58_v0 = vld [vmem:[#allocation3] sm:$0xff]  ;;  %v59_v1 = vld [vmem:[#allocation3 + $0x8] sm:$0xff]  ;;  %s167_s8 = scalar_lea.hbm %s241_s2, 16 }
  0x27   :  { %v60_v2 = vld [vmem:[#allocation6] sm:$0xff]  ;;  %v61_v3 = vld [vmem:[#allocation6 + $0x8] sm:$0xff]  ;;  %p168_p2 = scmp.ne.s32.totalorder %s241_s2, %s167_s8  ;;  %p171_p3 = scmp.lt.u32.totalorder %s167_s8, %s241_s2 }
  0x28   :  { %v62_v4 = vsub.f32 %v58_v0, %v60_v2  ;;  %v63_v5 = vsub.f32 %v59_v1, %v61_v3 }
  0x29   :  { %p173_p4 = pnand %p171_p3, %p168_p2 }
  0x2a   :  { %v64_v6 = vmul.f32 %v62_v4, %v62_v4  ;;  %v65_v7 = vmul.f32 %v63_v5, %v63_v5 }
  0x2c   :  { %v89_v8 = vadd.f32 %v65_v7, %v64_v6 }
  0x2e   :  { %90 = vadd.xlane.f32.xlu0 %v89_v8 }
  0xbb   :  { %v91_v9 = vpop.xlane.xlu0 %90 }
  0xbc   :  { %v92_v10 = vrot.slane %v91_v9, 4 }
  0xbe   :  { %v93_v11 = vadd.f32 %v92_v10, %v91_v9 }
  0xc0   :  { %v94_v12 = vrot.slane %v93_v11, 2 }
  0xc2   :  { %v95_v13 = vadd.f32 %v94_v12, %v93_v11 }
  0xc4   :  { %v96_v14 = vrot.slane %v95_v13, 1 }
  0xc6   :  { %v97_v15 = vadd.f32 %v96_v14, %v95_v13 }
  0xc8   :  { %116 = vpush %v97_v15 }
  0xf9   :  { %s117_s1 = spop %116 }
  0xfa   :  { %100 = sst [smem:[#allocation8]] %s117_s1 }
  0xfb   :  { %176 = shalt.err (!%p173_p4)
}
  0xfc   :  { %s187_s13 = smov [#allocation8]  }
  0xfd   :  { %108 = dma.smem_to_hbm %s187_s13, 16, %s241_s2, [#allocation5]  }
  0xfe   :  { %181 = dma.done.wait [#allocation5], 16  }
  0xff   :  { %182 = vsyncadd [#allocation5], 4294967280 }
 0x100   :  { %112 = sfence }
 0x101   :  { %113 = vsyncpa [#allocation4], 1 }
 0x102   :  { %114 = vsyncpa [#allocation7], 1 }
 0x103   :  { %115 = vsyncpa [#allocation5], 1 }

</bundles_post_ra>
